<compile_context>
chip_gen: v7x
topology: tpu7x:2x2x1
jax: 0.10.0
libtpu: 0.0.40
codegen_flags: <defaults>
</compile_context>

<pallas_src>
import jax
import jax.numpy as jnp
from jax.experimental import pallas as pl
from jax.experimental.pallas import tpu as pltpu


# ----------------------- packed parameter-table layout ---------------------- #
_SPH = (0, 3, 6, 9)     # lane index of softplus(h) for f1..f4
_BB = (1, 4, 7, 10)     # lane index of b           for f1..f4
_TA = (2, 5, 8)         # lane index of tanh(a)     for f1..f3
_P_COLS = 16            # padded lane width of the parameter table


# ------------------------------ Pallas kernel ------------------------------ #
def _bit_estimator_kernel(x_ref, p_ref, o_ref):
    x = x_ref[...].astype(jnp.float32)   # (TM, TL) activation tile, f32 math
    p = p_ref[...]                       # (TM, 16) per-row (per-channel) params

    def col(k):                          # (TM, 1) slice, lane-broadcast against x
        return p[:, k:k + 1]

    # f1..f3:  t = x*softplus(h) + b ;  x = t + tanh(t)*tanh(a)
    for i in range(3):
        t = x * col(_SPH[i]) + col(_BB[i])
        x = t + jnp.tanh(t) * col(_TA[i])

    # f4 (final): sigmoid(z) == 0.5 + 0.5*tanh(0.5*z)  (one tanh, no exp/divide)
    z = x * col(_SPH[3]) + col(_BB[3])
    o_ref[...] = (0.5 + 0.5 * jnp.tanh(0.5 * z)).astype(o_ref.dtype)


# ------------------------------- JAX wrapper -------------------------------- #
def _round_up(x, m):
    return ((x + m - 1) // m) * m


def bit_estimator_forward(x_nchw, hs, bs, as_, *, max_tm=256, max_tl=4096):
    """BitEstimator forward.

    x_nchw : (N, C, H, W) float input
    hs, bs : 4 arrays each of shape (1, C, 1, 1)   (f1..f4 .h / .b)
    as_    : 3 arrays each of shape (1, C, 1, 1)   (f1..f3 .a)
    """
    n, c, h, w = x_nchw.shape
    rows, cols = n * c, h * w

    # Tiny per-channel parameter preprocessing stays in plain JAX.
    param_cols = []
    for i in range(4):
        param_cols.append(jax.nn.softplus(hs[i].reshape(c)))
        param_cols.append(bs[i].reshape(c))
        param_cols.append(jnp.tanh(as_[i].reshape(c)) if i < 3
                          else jnp.zeros((c,), jnp.float32))
    ptab = jnp.stack(param_cols, axis=1).astype(jnp.float32)      # (C, 12)
    ptab = jnp.pad(ptab, ((0, 0), (0, _P_COLS - ptab.shape[1])))  # (C, 16)
    prow = jnp.tile(ptab, (n, 1))            # (N*C, 16); row r -> channel r % C

    # Tile selection: NO activation padding.  Each block dim is either a
    # multiple of (8, 128) or covers the full array dim; pl.cdiv grids give
    # masked edge blocks, safe for elementwise work.
    assert max_tm % 8 == 0 and max_tl % 128 == 0
    tm = rows if rows <= max_tm else max_tm
    tl = cols if cols <= max_tl else max_tl
    grid_r, grid_c = pl.cdiv(rows, tm), pl.cdiv(cols, tl)

    # v7x has 2 TensorCores: make sure the "parallel" grid has >=2 blocks when possible.
    if grid_r * grid_c == 1:
        if rows >= 16:
            tm = _round_up(pl.cdiv(rows, 2), 8)
        elif cols >= 256:
            tl = _round_up(pl.cdiv(cols, 2), 128)
        grid_r, grid_c = pl.cdiv(rows, tm), pl.cdiv(cols, tl)

    x2 = x_nchw.reshape(rows, cols)          # contiguous reshape: no transpose, no HBM pass

    nelem = rows * cols
    cost = pl.CostEstimate(
        flops=17 * nelem,
        transcendentals=4 * nelem,
        bytes_accessed=nelem * 2 * x2.dtype.itemsize + prow.size * 4,
    )

    out = pl.pallas_call(
        _bit_estimator_kernel,
        out_shape=jax.ShapeDtypeStruct((rows, cols), x_nchw.dtype),
        grid_spec=pl.GridSpec(
            grid=(grid_r, grid_c),                                  # lane axis j innermost
            in_specs=[
                pl.BlockSpec((tm, tl), lambda i, j: (i, j)),        # activation tile
                pl.BlockSpec((tm, _P_COLS), lambda i, j: (i, 0)),   # params, resident across j
            ],
            out_specs=pl.BlockSpec((tm, tl), lambda i, j: (i, j)),  # lane-dense output
        ),
        compiler_params=pltpu.CompilerParams(
            dimension_semantics=("parallel", "parallel"),
            vmem_limit_bytes=48 * 1024 * 1024,
        ),
        cost_estimate=cost,
    )(x2, prow)

    return out.reshape(n, c, h, w)


# --------------------------- plain-JAX reference ---------------------------- #
def bit_estimator_ref(x, hs, bs, as_):
    for i in range(3):
        t = x * jax.nn.softplus(hs[i]) + bs[i]
        x = t + jnp.tanh(t) * jnp.tanh(as_[i])
    return jax.nn.sigmoid(x * jax.nn.softplus(hs[3]) + bs[3])


# --------------------------------- demo ------------------------------------- #
if __name__ == "__main__":
    key = jax.random.PRNGKey(0)
    N, C, H, W = 2, 4, 16, 16
    keys = jax.random.split(key, 12)

    # nn.init.normal_(..., 0, 0.01) stand-ins, shape (1, C, 1, 1) like the module
    hs = [0.01 * jax.random.normal(keys[i], (1, C, 1, 1), jnp.float32) for i in range(4)]
    bs = [0.01 * jax.random.normal(keys[4 + i], (1, C, 1, 1), jnp.float32) for i in range(4)]
    as_ = [0.01 * jax.random.normal(keys[8 + i], (1, C, 1, 1), jnp.float32) for i in range(3)]
    x = jax.random.normal(keys[11], (N, C, H, W), jnp.float32)

    y = bit_estimator_forward(x, hs, bs, as_)
    jax.block_until_ready(y)
    assert y.shape == (N, C, H, W)

    y_ref = bit_estimator_ref(x, hs, bs, as_)
    assert jnp.allclose(y, y_ref, atol=1e-3, rtol=1e-3), float(jnp.max(jnp.abs(y - y_ref)))
    print("KERNEL_OK")
</pallas_src>

<mosaic_0001>
module attributes {stable_mosaic.version = 11 : i64} {
  func.func @_bit_estimator_kernel(%arg0: i32, %arg1: i32, %arg2: memref<8x128xf32, #tpu.memory_space<vmem>>, %arg3: memref<8x16xf32, #tpu.memory_space<vmem>>, %arg4: memref<8x128xf32, #tpu.memory_space<vmem>>) attributes {dimension_semantics = [#tpu.dimension_semantics<parallel>, #tpu.dimension_semantics<parallel>], iteration_bounds = array<i64: 1, 2>, scalar_prefetch = 0 : i64, scratch_operands = 0 : i64, tpu.core_type = #tpu.core_type<tc>, window_params = [{transform_indices = @transform_0, window_bounds = array<i64: 8, 128>}, {transform_indices = @transform_1, window_bounds = array<i64: 8, 16>}, {transform_indices = @transform_2, window_bounds = array<i64: 8, 128>}]} {
    %c0 = arith.constant 0 : index
    %c0_0 = arith.constant 0 : index
    %0 = vector.load %arg2[%c0, %c0_0] : memref<8x128xf32, #tpu.memory_space<vmem>>, vector<8x128xf32>
    %c0_1 = arith.constant 0 : index
    %c0_2 = arith.constant 0 : index
    %1 = vector.load %arg3[%c0_1, %c0_2] : memref<8x16xf32, #tpu.memory_space<vmem>>, vector<8x16xf32>
    %2 = vector.extract_strided_slice %1 {offsets = [0, 0], sizes = [8, 1], strides = [1, 1]} : vector<8x16xf32> to vector<8x1xf32>
    %3 = vector.broadcast %2 : vector<8x1xf32> to vector<8x128xf32>
    %4 = arith.mulf %0, %3 : vector<8x128xf32>
    %5 = vector.extract_strided_slice %1 {offsets = [0, 1], sizes = [8, 1], strides = [1, 1]} : vector<8x16xf32> to vector<8x1xf32>
    %6 = vector.broadcast %5 : vector<8x1xf32> to vector<8x128xf32>
    %7 = arith.addf %4, %6 : vector<8x128xf32>
    %8 = math.tanh %7 : vector<8x128xf32>
    %9 = vector.extract_strided_slice %1 {offsets = [0, 2], sizes = [8, 1], strides = [1, 1]} : vector<8x16xf32> to vector<8x1xf32>
    %10 = vector.broadcast %9 : vector<8x1xf32> to vector<8x128xf32>
    %11 = arith.mulf %8, %10 : vector<8x128xf32>
    %12 = arith.addf %7, %11 : vector<8x128xf32>
    %13 = vector.extract_strided_slice %1 {offsets = [0, 3], sizes = [8, 1], strides = [1, 1]} : vector<8x16xf32> to vector<8x1xf32>
    %14 = vector.broadcast %13 : vector<8x1xf32> to vector<8x128xf32>
    %15 = arith.mulf %12, %14 : vector<8x128xf32>
    %16 = vector.extract_strided_slice %1 {offsets = [0, 4], sizes = [8, 1], strides = [1, 1]} : vector<8x16xf32> to vector<8x1xf32>
    %17 = vector.broadcast %16 : vector<8x1xf32> to vector<8x128xf32>
    %18 = arith.addf %15, %17 : vector<8x128xf32>
    %19 = math.tanh %18 : vector<8x128xf32>
    %20 = vector.extract_strided_slice %1 {offsets = [0, 5], sizes = [8, 1], strides = [1, 1]} : vector<8x16xf32> to vector<8x1xf32>
    %21 = vector.broadcast %20 : vector<8x1xf32> to vector<8x128xf32>
    %22 = arith.mulf %19, %21 : vector<8x128xf32>
    %23 = arith.addf %18, %22 : vector<8x128xf32>
    %24 = vector.extract_strided_slice %1 {offsets = [0, 6], sizes = [8, 1], strides = [1, 1]} : vector<8x16xf32> to vector<8x1xf32>
    %25 = vector.broadcast %24 : vector<8x1xf32> to vector<8x128xf32>
    %26 = arith.mulf %23, %25 : vector<8x128xf32>
    %27 = vector.extract_strided_slice %1 {offsets = [0, 7], sizes = [8, 1], strides = [1, 1]} : vector<8x16xf32> to vector<8x1xf32>
    %28 = vector.broadcast %27 : vector<8x1xf32> to vector<8x128xf32>
    %29 = arith.addf %26, %28 : vector<8x128xf32>
    %30 = math.tanh %29 : vector<8x128xf32>
    %31 = vector.extract_strided_slice %1 {offsets = [0, 8], sizes = [8, 1], strides = [1, 1]} : vector<8x16xf32> to vector<8x1xf32>
    %32 = vector.broadcast %31 : vector<8x1xf32> to vector<8x128xf32>
    %33 = arith.mulf %30, %32 : vector<8x128xf32>
    %34 = arith.addf %29, %33 : vector<8x128xf32>
    %35 = vector.extract_strided_slice %1 {offsets = [0, 9], sizes = [8, 1], strides = [1, 1]} : vector<8x16xf32> to vector<8x1xf32>
    %36 = vector.broadcast %35 : vector<8x1xf32> to vector<8x128xf32>
    %37 = arith.mulf %34, %36 : vector<8x128xf32>
    %38 = vector.extract_strided_slice %1 {offsets = [0, 10], sizes = [8, 1], strides = [1, 1]} : vector<8x16xf32> to vector<8x1xf32>
    %39 = vector.broadcast %38 : vector<8x1xf32> to vector<8x128xf32>
    %40 = arith.addf %37, %39 : vector<8x128xf32>
    %cst = arith.constant 5.000000e-01 : f32
    %41 = vector.broadcast %cst : f32 to vector<8x128xf32>
    %42 = arith.mulf %41, %40 : vector<8x128xf32>
    %43 = math.tanh %42 : vector<8x128xf32>
    %cst_3 = arith.constant 5.000000e-01 : f32
    %44 = vector.broadcast %cst_3 : f32 to vector<8x128xf32>
    %45 = arith.mulf %44, %43 : vector<8x128xf32>
    %cst_4 = arith.constant 5.000000e-01 : f32
    %46 = vector.broadcast %cst_4 : f32 to vector<8x128xf32>
    %47 = arith.addf %46, %45 : vector<8x128xf32>
    %c0_5 = arith.constant 0 : index
    %c0_6 = arith.constant 0 : index
    %48 = vector.load %arg4[%c0_5, %c0_6] : memref<8x128xf32, #tpu.memory_space<vmem>>, vector<8x128xf32>
    tpu.vector_store %arg4[%c0_5, %c0_6], %47 {strides = array<i32>} : memref<8x128xf32, #tpu.memory_space<vmem>>, vector<8x128xf32>,
    return
  }
  func.func @transform_0(%arg0: i32, %arg1: i32) -> (i32, i32) {
    %c0_i32 = arith.constant 0 : i32
    return %arg0, %arg1 : i32, i32
  }
  func.func @transform_1(%arg0: i32, %arg1: i32) -> (i32, i32) {
    %c0_i32 = arith.constant 0 : i32
    %c0_i32_0 = arith.constant 0 : i32
    return %arg0, %c0_i32 : i32, i32
  }
  func.func @transform_2(%arg0: i32, %arg1: i32) -> (i32, i32) {
    %c0_i32 = arith.constant 0 : i32
    return %arg0, %arg1 : i32, i32
  }
}

</mosaic_0001>

<bundles_post_ra>
// kernel: tpu_custom_call.1
= control target key start
LH: loop header
LB: loop body
LE: loop exit
PB: predicated region body
PF: predicated region fallthrough
CT: control target
= control target key end

     0   :  { %7 = vsyncpa [#allocation3], 0  ;;  %s893_s0 = inlined_call_operand.hbm [shape: f32[8,256], index: 0, kind: input, shape index: {}]   ;;  %s894_s1 = inlined_call_operand.hbm [shape: f32[8,16], index: 1, kind: input, shape index: {}]   ;;  %s895_s2 = inlined_call_operand.hbm [shape: f32[8,256], index: 2, kind: output, shape index: {}]  }
   0x1   :  { %9 = vsyncpa [#allocation3 + $0x1], 0 }
   0x2   :  { %10 = vsyncpa [#allocation6], 0 }
   0x3   :  { %11 = vsyncpa [#allocation4], 0 }
   0x4   :  { %13 = vsyncpa [#allocation4 + $0x1], 0  ;;  %s670_s9 = smov 0   ;;  %s672_s10 = smov 0  }
   0x5   :  { %s674_s11 = smov 0   ;;  %s676_s12 = smov 0  }
   0x6   :  { %s678_s13 = smov 0   ;;  %s680_s14 = smov 0  }
   0x7 LB: > { %s376_s15 = sadd.s32 4294967295, %s639_s14   ;;  %s377_s16 = sadd.s32 4294967294, %s639_s14   ;;  %s639_s14 = sphi %s680_s14, %s19_s14   ;;  %s635_s13 = sphi %s678_s13, %s920_s13   ;;  %s631_s12 = sphi %s676_s12, %s919_s12   ;;  %s627_s11 = sphi %s674_s11, %s918_s11   ;;  %s623_s10 = sphi %s672_s10, %s917_s10   ;;  %s619_s9 = sphi %s670_s9, %s916_s9  }
   0x8   : > { %p53_p0 = scmp.ne.s32.totalorder %s623_s10, %s619_s9  ;;  %p704_p1 = scmp.eq.s32.totalorder %s376_s15, 0 }
   0x9   : > { %p708_p2 = scmp.eq.s32.totalorder %s376_s15, 1  ;;  %p111_p3 = scmp.eq.s32.totalorder %s377_s16, 1 }
   0xa   : > { %s900_s17 = scalar_select %p704_p1, 1, 0 }
   0xb   : > { %s901_s18 = scalar_select %p708_p2, 1, 0 }
   0xc   : > { %p714_p4 = por %p704_p1, %p53_p0  ;;  %p378_p5 = scmp.ge.s32.totalorder %s639_s14, 1 }
   0xd   : > { %p719_p6 = por %p111_p3, %p53_p0  ;;  %p118_p7 = scmp.lt.s32.totalorder %s639_s14, 3 }
   0xe   : > { %s902_s19 = scalar_select %p714_p4, 1, 0 }
   0xf   : > { %s903_s20 = scalar_select %p719_p6, 1, 0 }
  0x10   : > { %p724_p8 = pnand %p378_p5, %p118_p7  ;;  %s641_s22 = smov [#allocation5]  }
  0x11   : > { %s133_s23 = sshll.u32 %s641_s22, 4  ;;  %s28_s25 = sadd.s32 1, %s635_s13  ;;  %s134_s23 = int_to_ptr.vmem [resolvable:$true] %s133_s23 }
  0x12   : > { %s904_s21 = scalar_select %p724_p8, 1, 0 }
  0x13   : > { %p399_p10 = pneg %p724_p8  ;;  %s40_s26 = sadd.s32 1, %s627_s11 }
  0x14   : > { %p739_p12 = scmp.ge.s32.totalorder %s28_s25, 2  ;;  %s495_s30 = scalar_lea.hbm %s894_s1, 128 }
  0x15   : > { %p733_p11 = pnand %p399_p10, %p704_p1  ;;  %p496_p13 = scmp.ne.s32.totalorder %s894_s1, %s495_s30 }
  0x16   : > { %s906_s27 = scalar_select %p739_p12, 1, 0 }
  0x17   : > { %p497_p0 = pneg %p733_p11  ;;  %p502_p7 = scmp.lt.u32.totalorder %s495_s30, %s894_s1 }
  0x19   : > { %p498_p3 = pnand %p497_p0, %p496_p13 }
  0x1b   : > { %p499_p5 = pneg %p498_p3 }
  0x1d   : > { %p504_p10 = pnand %p502_p7, %p499_p5 }
  0x1f   : > { %507 = shalt.err (!%p504_p10)
}
  0x20   : > { %s508_s7 = scalar_lea.vmem %s134_s23, 128  ;;  %p516_p4 = scmp.lt.s32.totalorder %s134_s23, %s134_s23 }
  0x21   : > { %p509_p9 = scmp.ne.s32.totalorder %s134_s23, %s508_s7  ;;  %p517_p8 = scmp.lt.s32.totalorder %s508_s7, %s508_s7 }
  0x23   : > { %p511_p6 = pnand %p509_p9, %p497_p0  ;;  %p518_p2 = por %p517_p8, %p516_p4 }
  0x25   : > { %p512_p1 = pneg %p511_p6 }
  0x27   : > { %p519_p12 = pnand %p518_p2, %p512_p1 }
  0x29   : > { %522 = shalt.err (!%p519_p12)
}
  0x2a   : > { %402 = dma.hbm_to_vmem [thread:$0]  (!%p733_p11), %s894_s1, 128, %s134_s23, [#allocation6]  }
  0x2b   : > { %p907_p4 = scmp.ne.s32.totalorder %s906_s27, 0  ;;  %p47_p1 = scmp.ne.s32.totalorder %s627_s11, %s623_s10 }
  0x2c   : > { %p48_p2 = scmp.eq.s32.totalorder %s639_s14, 0  ;;  %p412_p6 = scmp.lt.s32.totalorder %s639_s14, 2 }
  0x2d   : > { %s922_s25 = smov (%p907_p4, %s28_s25), 0  ;;  %p908_p12 = scmp.ne.s32.totalorder %s901_s18, 0 }
  0x2e   : > { %s36_s16 = ssub.s32 %s635_s13, %s922_s25  ;;  %p49_p9 = por %p48_p2, %p47_p1 }
  0x2f   : > { %p38_p8 = scmp.eq.s32.totalorder %s36_s16, 0  ;;  %p771_p13 = por %p908_p12, %p47_p1 }
  0x30   : > { %s144_s24 = sand.u32 1, %s627_s11   ;;  %s382_s27 = sshll.u32 %s635_s13, 7 }
  0x31   : > { %s779_s28 = scalar_select %p38_p8, %s627_s11, %s40_s26  }
  0x32   : > { %s381_s23 = sshll.u32 %s144_s24, 3  ;;  %s785_s3 = scalar_lea.hbm %s893_s0, %s382_s27 }
  0x33   : > { %s148_s18 = scalar_lea.vmem [#allocation2], %s381_s23  ;;  %p789_p11 = pnand %p412_p6, %p49_p9 }
  0x34   : > { %s157_s4 = sshll.u32 %s148_s18, 4  ;;  %s145_s26 = scalar_lea.sflag [#allocation3], %s144_s24  ;;  %s787_s4 = int_to_ptr.vmem [resolvable:$true] %s157_s4 }
  0x35   : > { %s523_s6 = scalar_lea.hbm %s785_s3, 128  ;;  %p525_p3 = pneg %p789_p11 }
  0x36   : > { %p524_p0 = scmp.ne.s32.totalorder %s785_s3, %s523_s6  ;;  %s528_s15 = scalar_lea.hbm %s893_s0, 256 }
  0x37   : > { %p529_p10 = scmp.lt.u32.totalorder %s785_s3, %s893_s0  ;;  %p530_p4 = scmp.lt.u32.totalorder %s528_s15, %s523_s6 }
  0x38   : > { %p526_p5 = pnand %p525_p3, %p524_p0  ;;  %p532_p2 = scmp.lt.u32.totalorder %s523_s6, %s785_s3 }
  0x39   : > { %p531_p1 = por %p530_p4, %p529_p10 }
  0x3a   : > { %p527_p7 = pneg %p526_p5 }
  0x3b   : > { %p533_p6 = por %p532_p2, %p531_p1 }
  0x3d   : > { %p534_p8 = pnand %p533_p6, %p527_p7 }
  0x3f   : > { %537 = shalt.err (!%p534_p8)
}
  0x40   : > { %s538_s24 = scalar_lea.vmem %s787_s4, 128  ;;  %s642_s27 = smov [#allocation2]  }
  0x41   : > { %p539_p9 = scmp.ne.s32.totalorder %s787_s4, %s538_s24  ;;  %s543_s29 = sshll.u32 %s642_s27, 4  ;;  %s544_s29 = int_to_ptr.vmem [resolvable:$false] %s543_s29 }
  0x42   : > { %s545_s30 = scalar_lea.vmem %s544_s29, 256  ;;  %p546_p5 = scmp.lt.s32.totalorder %s787_s4, %s544_s29 }
  0x43   : > { %p541_p12 = pnand %p539_p9, %p525_p3  ;;  %p547_p10 = scmp.lt.s32.totalorder %s545_s30, %s538_s24 }
  0x45   : > { %p542_p0 = pneg %p541_p12  ;;  %p548_p4 = por %p547_p10, %p546_p5 }
  0x47   : > { %p549_p1 = pnand %p548_p4, %p542_p0 }
  0x49   : > { %552 = shalt.err (!%p549_p1)
}
  0x4a   : > { %406 = dma.hbm_to_vmem [thread:$0]  (!%p789_p11), %s785_s3, 128, %s787_s4, %s145_s26  }
  0x4b   : > { %p911_p7 = scmp.ne.s32.totalorder %s904_s21, 0 }
  0x4c   : > { %s821_s18 = sand.u32 (!%p911_p7), 1, %s623_s10   ;;  %p912_p3 = scmp.ne.s32.totalorder (!%p911_p7), %s902_s19, 0 }
  0x4d   : > { %166 = sbr.rel (%p911_p7) target bundleno = 313 (0x139), region = 28  ;;  %s384_s6 = sshll.u32 (!%p911_p7), %s821_s18, 3 }
  0x4e   : > { %s169_s7 = scalar_lea.sflag (!%p911_p7), [#allocation3], %s821_s18  ;;  %s827_s8 = scalar_lea.vmem (!%p911_p7), [#allocation2], %s384_s6 }
  0x54   : > { %606 = dma.done.wait (%p912_p3), %s169_s7, 128  }
  0x55   : > { %608 = vsyncadd (%p912_p3), %s169_s7, 4294967168  ;;  %p913_p11 = scmp.ne.s32.totalorder %s900_s17, 0 }
  0x57   : > { %610 = dma.done.wait (%p913_p11), [#allocation6], 128  }
  0x58   : > { %612 = vsyncadd (%p913_p11), [#allocation6], 4294967168  ;;  %v643_v0 = vmov 0   ;;  %v644_v1 = vmov 2   ;;  %v198_v2 = vld [vmem:[#allocation5] sm:$0xff]  ;;  %v645_v3 = vmov 1  }
  0x59   : > { %475 = vset.pattern.permute.xlu0 %v643_v0  ;;  %477 = vset.pattern.permute.xlu1 %v644_v1  ;;  %v646_v4 = vmov 3   ;;  %v647_v5 = vmov 4   ;;  %v648_v6 = vmov 5   ;;  %v649_v7 = vmov 6   ;;  %v197_v13 = vld [vmem:[%s827_s8] sm:$0xff]  ;;  %s388_s17 = sshll.u32 %s631_s12, 7 }
  0x5a   : > { %201 = vperm.xlu0 %475, %v198_v2   ;;  %212 = vperm.xlu1 %477, %v198_v2   ;;  %v650_v8 = vmov 8   ;;  %v651_v9 = vmov 7   ;;  %v652_v10 = vmov 10   ;;  %v653_v11 = vmov 9   ;;  %s196_s19 = scalar_lea.vmem [#allocation7], %s384_s6  ;;  %s844_s5 = scalar_lea.hbm %s895_s2, %s388_s17 }
  0x5b   : > { %s282_s21 = sshll.u32 %s196_s19, 4  ;;  %s267_s26 = scalar_lea.sflag [#allocation4], %s821_s18  ;;  %s846_s21 = int_to_ptr.vmem [resolvable:$true] %s282_s21 }
  0x5c   : > { %s553_s15 = scalar_lea.vmem %s846_s21, 128  ;;  %s654_s12 = smov [#allocation7]  }
  0x5d   : > { %p554_p2 = scmp.ne.s32.totalorder %s846_s21, %s553_s15  ;;  %s557_s16 = sshll.u32 %s654_s12, 4  ;;  %s558_s16 = int_to_ptr.vmem [resolvable:$false] %s557_s16 }
  0x5e   : > { %476 = vset.pattern.permute.xlu0 %v645_v3  ;;  %478 = vset.pattern.permute.xlu1 %v646_v4  ;;  %s559_s23 = scalar_lea.vmem %s558_s16, 256  ;;  %p560_p9 = scmp.lt.s32.totalorder %s846_s21, %s558_s16 }
  0x5f   : > { %206 = vperm.xlu0 %476, %v198_v2   ;;  %218 = vperm.xlu1 %478, %v198_v2   ;;  %p555_p6 = pnand %p554_p2, %p771_p13  ;;  %p561_p12 = scmp.lt.s32.totalorder %s559_s23, %s553_s15 }
  0x61   : > { %p556_p8 = pneg %p555_p6  ;;  %p562_p0 = por %p561_p12, %p560_p9 }
  0x63   : > { %479 = vset.pattern.permute.xlu1 %v647_v5  ;;  %480 = vset.pattern.permute.xlu0 %v648_v6  ;;  %p563_p5 = pnand %p562_p0, %p556_p8 }
  0x64   : > { %223 = vperm.xlu1 %479, %v198_v2   ;;  %229 = vperm.xlu0 %480, %v198_v2  }
  0x68   : > { %481 = vset.pattern.permute.xlu1 %v649_v7  ;;  %483 = vset.pattern.permute.xlu0 %v650_v8 }
  0x69   : > { %235 = vperm.xlu1 %481, %v198_v2   ;;  %246 = vperm.xlu0 %483, %v198_v2  }
  0x6d   : > { %482 = vset.pattern.permute.xlu1 %v651_v9  ;;  %486 = vset.pattern.permute.xlu0 %v652_v10 }
  0x6e   : > { %240 = vperm.xlu1 %482, %v198_v2  }
  0x72   : > { %484 = vset.pattern.permute.xlu1 %v653_v11 }
  0x73   : > { %252 = vperm.xlu1 %484, %v198_v2  }
  0x77   : > { %485 = vset.pattern.permute.xlu1 %v652_v10 }
  0x78   : > { %257 = vperm.xlu1 %485, %v198_v2  }
  0xd9   : > { %v202_v12 = vpop.permute.xlu0 %201  ;;  %v213_v17 = vpop.permute.xlu1 %212 }
  0xda   : > { %v204_v14 = vmul.f32 %v202_v12, %v197_v13 }
  0xde   : > { %v207_v15 = vpop.permute.xlu0 %206  ;;  %v219_v18 = vpop.permute.xlu1 %218 }
  0xdf   : > { %v209_v16 = vadd.f32 %v207_v15, %v204_v14 }
  0xe1   : > { %487 = vtanh.f32 %v209_v16 }
  0xe3   : > { %v224_v22 = vpop.permute.xlu1 %223  ;;  %v230_v25 = vpop.permute.xlu0 %229 }
  0xe8   : > { %v236_v26 = vpop.permute.xlu1 %235  ;;  %v247_v33 = vpop.permute.xlu0 %246 }
  0xeb   : > { %v488_v19 = vpop.eup %487 }
  0xec   : > { %v215_v20 = vmul.f32 %v488_v19, %v213_v17 }
  0xed   : > { %v241_v30 = vpop.permute.xlu1 %240 }
  0xee   : > { %v216_v21 = vadd.f32 %v215_v20, %v209_v16 }
  0xf0   : > { %v221_v23 = vmul.f32 %v219_v18, %v216_v21 }
  0xf2   : > { %v226_v24 = vadd.f32 %v224_v22, %v221_v23  ;;  %v253_v34 = vpop.permute.xlu1 %252 }
  0xf4   : > { %489 = vtanh.f32 %v226_v24 }
  0xf7   : > { %v258_v38 = vpop.permute.xlu1 %257 }
  0xfe   : > { %v490_v27 = vpop.eup %489 }
  0xff   : > { %v232_v28 = vmul.f32 %v490_v27, %v230_v25 }
 0x101   : > { %v233_v29 = vadd.f32 %v232_v28, %v226_v24 }
 0x103   : > { %v238_v31 = vmul.f32 %v236_v26, %v233_v29 }
 0x105   : > { %v243_v32 = vadd.f32 %v241_v30, %v238_v31 }
 0x107   : > { %491 = vtanh.f32 %v243_v32 }
 0x111   : > { %v492_v35 = vpop.eup %491 }
 0x112   : > { %v249_v36 = vmul.f32 %v492_v35, %v247_v33 }
 0x114   : > { %v250_v37 = vadd.f32 %v249_v36, %v243_v32 }
 0x116   : > { %v255_v39 = vmul.f32 %v253_v34, %v250_v37 }
 0x118   : > { %v260_v40 = vadd.f32 %v258_v38, %v255_v39 }
 0x11a   : > { %v261_v41 = vmul.f32 0.5, %v260_v40 }
 0x11c   : > { %493 = vtanh.f32 %v261_v41 }
 0x126   : > { %v494_v42 = vpop.eup %493 }
 0x127   : > { %v263_v43 = vmul.f32 0.5, %v494_v42 }
 0x129   : > { %v264_v44 = vadd.f32 0.5, %v263_v43 }
 0x12b   : > { %265 = vst [vmem:[%s196_s19] sm:$0xff] %v264_v44 }
 0x12c   : > { %566 = shalt.err (!%p563_p5)
}
 0x12d   : > { %s567_s24 = scalar_lea.hbm %s844_s5, 128  ;;  %s571_s30 = scalar_lea.hbm %s895_s2, 256 }
 0x12e   : > { %p568_p10 = scmp.ne.s32.totalorder %s844_s5, %s567_s24  ;;  %p572_p7 = scmp.lt.u32.totalorder %s844_s5, %s895_s2 }
 0x12f   : > { %p573_p3 = scmp.lt.u32.totalorder %s571_s30, %s567_s24  ;;  %p575_p2 = scmp.lt.u32.totalorder %s567_s24, %s844_s5 }
 0x130   : > { %p569_p4 = pnand %p568_p10, %p771_p13 }
 0x131   : > { %p574_p11 = por %p573_p3, %p572_p7 }
 0x132   : > { %p570_p1 = pneg %p569_p4 }
 0x133   : > { %p576_p6 = por %p575_p2, %p574_p11 }
 0x135   : > { %p577_p8 = pnand %p576_p6, %p570_p1 }
 0x137   : > { %580 = shalt.err (!%p577_p8)
}
 0x138   : > { %397 = dma.vmem_to_hbm [thread:$0]  (%p771_p13), %s846_s21, 128, %s844_s5, %s267_s26  }
 0x139 PF: > { %s294_s7 = sand.u32 1, %s619_s9   ;;  %p914_p9 = scmp.ne.s32.totalorder %s903_s20, 0 }
 0x13a   : > { %p915_p12 = scmp.ge.s32.totalorder %s639_s14, 2  ;;  %s295_s8 = scalar_lea.sflag [#allocation4], %s294_s7 }
 0x13c   : > { %p408_p0 = pnand %p915_p12, %p914_p9 }
 0x13e   : > { %614 = dma.done.wait (!%p408_p0), %s295_s8, 128  }
 0x13f   : > { %616 = vsyncadd (!%p408_p0), %s295_s8, 4294967168  ;;  %s19_s14 = sadd.s32 1, %s639_s14   ;;  %s916_s9 = smov %s623_s10 }
 0x140   : > { %p16_p5 = scmp.ge.s32.totalorder %s19_s14, 4   ;;  %s917_s10 = smov %s627_s11 }
 0x141   : > { %s918_s11 = smov %s779_s28  ;;  %s919_s12 = smov %s635_s13 }
 0x142   : > { %s920_s13 = smov %s922_s25  ;;  %18 = sbr.rel (!%p16_p5) target bundleno = 7 (0x7), region = 78 }
 0x149   :  { %300 = vsyncpa [#allocation3], 1 }
 0x14a   :  { %302 = vsyncpa [#allocation3 + $0x1], 1 }
 0x14b   :  { %303 = vsyncpa [#allocation6], 1 }
 0x14c   :  { %304 = vsyncpa [#allocation4], 1 }
 0x14d   :  { %306 = vsyncpa [#allocation4 + $0x1], 1 }

</bundles_post_ra>
